<compile_context>
chip_gen: v6e
topology: v6e:2x2x1
jax: 0.10.0
libtpu: 0.0.40
codegen_flags: <defaults>
</compile_context>

<pallas_src>
import functools

import jax
import jax.numpy as jnp
from jax.experimental import pallas as pl
from jax.experimental.pallas import tpu as pltpu


# ---------------------------------------------------------------------------
# Fused kernel: all layers in one pass, intermediates stay in vregs/VMEM.
# ---------------------------------------------------------------------------
def _gcn_fused_kernel(a_ref, x_ref, w_ref, b_ref, out_ref, *, num_layers):
    a = a_ref[...]                      # [Np, Np]      f32 normalized adjacency
    h = x_ref[...]                      # [Np, Fp]      bf16 node features
    for l in range(num_layers):         # static unroll (num_layers is static)
        w = w_ref[l]                    # [Fp, Fp]      bf16
        b = b_ref[l]                    # [1,  Fp]      f32
        # Feature transform on the MXU (bf16 in, f32 accumulate).
        hw = jnp.dot(h, w, preferred_element_type=jnp.float32)     # [Np, Fp] f32
        # Neighbor aggregation (tiny 8x8 LHS, keep f32).
        hf = jnp.dot(a, hw, preferred_element_type=jnp.float32)    # [Np, Fp] f32
        hf = hf + b                                                 # bias broadcast
        if l < num_layers - 1:
            hf = jnp.maximum(hf, 0.0)                               # relu (not last)
            h = hf.astype(jnp.bfloat16)
        else:
            h = hf
    out_ref[...] = h.astype(out_ref.dtype)


def _round_up(x, m):
    return ((x + m - 1) // m) * m


# ---------------------------------------------------------------------------
# Wrapper: constants padded once at build time, jitted per-call path.
# ---------------------------------------------------------------------------
def make_gcn_forward(a_norm, params, n_nodes, in_feats, out_feats):
    """Returns a jitted `forward(x) -> [n_nodes, out_feats]` closure."""
    num_layers = len(params)

    # Padded, hardware-friendly shapes.
    n_pad = _round_up(max(n_nodes, 8), 8)
    f_max = max([in_feats, out_feats] + [w.shape[1] for (w, _) in params])
    f_pad = _round_up(max(f_max, 128), 128)
    # TODO(synk): if hidden/output dims ever exceed 128, pad each layer's W to
    # its own rounded dims instead of a single global f_pad.

    # ---- Constant padding, done ONCE (hoisted out of the per-call path). ----
    a_p = (jnp.zeros((n_pad, n_pad), jnp.float32)
           .at[:n_nodes, :n_nodes].set(a_norm))
    w_stack = jnp.zeros((num_layers, f_pad, f_pad), jnp.float32)
    b_stack = jnp.zeros((num_layers, 1, f_pad), jnp.float32)
    for l, (w, b) in enumerate(params):
        fi, fo = w.shape
        w_stack = w_stack.at[l, :fi, :fo].set(w)
        b_stack = b_stack.at[l, :, :fo].set(b.reshape(1, fo))
    w_stack = w_stack.astype(jnp.bfloat16)      # bf16 MXU operands
    a_p = jax.device_put(a_p)
    w_stack = jax.device_put(w_stack)
    b_stack = jax.device_put(b_stack)

    kernel = functools.partial(_gcn_fused_kernel, num_layers=num_layers)
    vmem = pltpu.MemorySpace.VMEM

    flops = 2 * num_layers * (n_pad * f_pad * f_pad + n_pad * n_pad * f_pad)
    bytes_accessed = (a_p.size * 4 + n_pad * f_pad * 2
                      + w_stack.size * 2 + b_stack.size * 4
                      + n_pad * f_pad * 4)
    cost = pl.CostEstimate(flops=flops, transcendentals=0,
                           bytes_accessed=bytes_accessed)

    call = pl.pallas_call(
        kernel,
        out_shape=jax.ShapeDtypeStruct((n_pad, f_pad), jnp.float32),
        in_specs=[pl.BlockSpec(memory_space=vmem)] * 4,
        out_specs=pl.BlockSpec(memory_space=vmem),
        cost_estimate=cost,
    )

    @jax.jit
    def forward(x):
        x_p = (jnp.zeros((n_pad, f_pad), jnp.bfloat16)
               .at[:n_nodes, :in_feats].set(x.astype(jnp.bfloat16)))
        out_p = call(a_p, x_p, w_stack, b_stack)
        return out_p[:n_nodes, :out_feats]

    return forward


# ---------------------------------------------------------------------------
# Preprocessing / params (plain JAX, done once).
# ---------------------------------------------------------------------------
def build_normalized_adjacency(edges, n_nodes):
    """A_hat = D^{-1/2} (A + I) D^{-1/2} for an undirected graph."""
    a = jnp.zeros((n_nodes, n_nodes), dtype=jnp.float32)
    for (u, v) in edges:
        a = a.at[u, v].set(1.0)
        a = a.at[v, u].set(1.0)
    idx = jnp.arange(n_nodes)
    a = a.at[idx, idx].set(0.0)          # avoid double-counting self loops
    a = a + jnp.eye(n_nodes, dtype=jnp.float32)
    deg = jnp.sum(a, axis=1)
    d_inv_sqrt = 1.0 / jnp.sqrt(deg)
    return a * d_inv_sqrt[:, None] * d_inv_sqrt[None, :]


def init_params(key, num_layers, in_feats, h_feats, out_feats):
    """Deterministic Glorot-uniform weights + zero bias, per GraphConv."""
    if num_layers >= 2:
        dims = [(in_feats, h_feats)]
        dims += [(h_feats, h_feats) for _ in range(num_layers - 2)]
        dims += [(h_feats, out_feats)]
    else:
        dims = [(in_feats, out_feats)]
    params = []
    for (fi, fo) in dims:
        key, sub = jax.random.split(key)
        limit = jnp.sqrt(6.0 / (fi + fo))
        w = jax.random.uniform(sub, (fi, fo), jnp.float32, -limit, limit)
        b = jnp.zeros((1, fo), jnp.float32)
        params.append((w, b))
    return params


if __name__ == "__main__":
    # Small, module-consistent shapes: 4-node graph, 3 GraphConv layers.
    num_layers, in_feats, h_feats, out_feats = 3, 16, 32, 8
    n_nodes = 4

    key = jax.random.PRNGKey(0)
    key, kx = jax.random.split(key)
    x = jax.random.normal(kx, (n_nodes, in_feats), dtype=jnp.float32)

    # 4-node ring graph: 0-1-2-3-0
    edges = [(0, 1), (1, 2), (2, 3), (3, 0)]
    a_norm = build_normalized_adjacency(edges, n_nodes)

    params = init_params(key, num_layers, in_feats, h_feats, out_feats)

    forward = make_gcn_forward(a_norm, params, n_nodes, in_feats, out_feats)
    out = forward(x)
    jax.block_until_ready(out)

    # Sanity check against a pure-JAX f32 reference (unpadded math).  The
    # kernel uses bf16 MXU inputs with f32 accumulation, so the tolerance is
    # relaxed vs. a pure-f32 comparison.
    h_ref = x
    for l, (w, b) in enumerate(params):
        h_ref = a_norm @ (h_ref @ w) + b
        if l < num_layers - 1:
            h_ref = jnp.maximum(h_ref, 0.0)
    assert out.shape == (n_nodes, out_feats)
    assert jnp.allclose(out, h_ref, atol=5e-2, rtol=5e-2), (
        float(jnp.max(jnp.abs(out - h_ref))))

    print("KERNEL_OK")
</pallas_src>

<mosaic_0001>
module attributes {stable_mosaic.version = 11 : i64} {
  func.func @_gcn_fused_kernel(%arg0: memref<8x8xf32, #tpu.memory_space<vmem>>, %arg1: memref<8x128xbf16, #tpu.memory_space<vmem>>, %arg2: memref<3x128x128xbf16, #tpu.memory_space<vmem>>, %arg3: memref<3x1x128xf32, #tpu.memory_space<vmem>>, %arg4: memref<8x128xf32, #tpu.memory_space<vmem>>) attributes {dimension_semantics = [], scalar_prefetch = 0 : i64, scratch_operands = 0 : i64, tpu.core_type = #tpu.core_type<tc>} {
    %c0 = arith.constant 0 : index
    %c0_0 = arith.constant 0 : index
    %0 = vector.load %arg0[%c0, %c0_0] : memref<8x8xf32, #tpu.memory_space<vmem>>, vector<8x8xf32>
    %c0_1 = arith.constant 0 : index
    %c0_2 = arith.constant 0 : index
    %1 = vector.load %arg1[%c0_1, %c0_2] : memref<8x128xbf16, #tpu.memory_space<vmem>>, vector<8x128xbf16>
    %c0_3 = arith.constant 0 : index
    %c0_4 = arith.constant 0 : index
    %c0_5 = arith.constant 0 : index
    %2 = vector.load %arg2[%c0_3, %c0_4, %c0_5] : memref<3x128x128xbf16, #tpu.memory_space<vmem>>, vector<1x128x128xbf16>
    %3 = vector.shape_cast %2 : vector<1x128x128xbf16> to vector<128x128xbf16>
    %c0_6 = arith.constant 0 : index
    %c0_7 = arith.constant 0 : index
    %c0_8 = arith.constant 0 : index
    %4 = vector.load %arg3[%c0_6, %c0_7, %c0_8] : memref<3x1x128xf32, #tpu.memory_space<vmem>>, vector<1x1x128xf32>
    %5 = vector.shape_cast %4 : vector<1x1x128xf32> to vector<1x128xf32>
    %cst = arith.constant dense<0.000000e+00> : vector<8x128xf32>
    %6 = tpu.matmul %1, %3, %cst {dimension_numbers = #tpu.dot_dimension_numbers<[1], [0], [0], [1], [0, 0, 1, 1], [], []>} : vector<8x128xbf16>, vector<128x128xbf16>, vector<8x128xf32> -> vector<8x128xf32>
    %cst_9 = arith.constant dense<0.000000e+00> : vector<8x128xf32>
    %7 = tpu.matmul %0, %6, %cst_9 {dimension_numbers = #tpu.dot_dimension_numbers<[1], [0], [0], [1], [0, 0, 1, 1], [], []>} : vector<8x8xf32>, vector<8x128xf32>, vector<8x128xf32> -> vector<8x128xf32>
    %8 = vector.broadcast %5 : vector<1x128xf32> to vector<8x128xf32>
    %9 = arith.addf %7, %8 : vector<8x128xf32>
    %cst_10 = arith.constant 0.000000e+00 : f32
    %10 = vector.broadcast %cst_10 : f32 to vector<8x128xf32>
    %11 = arith.maximumf %9, %10 : vector<8x128xf32>
    %12 = arith.truncf %11 : vector<8x128xf32> to vector<8x128xbf16>
    %c1 = arith.constant 1 : index
    %c0_11 = arith.constant 0 : index
    %c0_12 = arith.constant 0 : index
    %13 = vector.load %arg2[%c1, %c0_11, %c0_12] : memref<3x128x128xbf16, #tpu.memory_space<vmem>>, vector<1x128x128xbf16>
    %14 = vector.shape_cast %13 : vector<1x128x128xbf16> to vector<128x128xbf16>
    %c1_13 = arith.constant 1 : index
    %c0_14 = arith.constant 0 : index
    %c0_15 = arith.constant 0 : index
    %15 = vector.load %arg3[%c1_13, %c0_14, %c0_15] : memref<3x1x128xf32, #tpu.memory_space<vmem>>, vector<1x1x128xf32>
    %16 = vector.shape_cast %15 : vector<1x1x128xf32> to vector<1x128xf32>
    %cst_16 = arith.constant dense<0.000000e+00> : vector<8x128xf32>
    %17 = tpu.matmul %12, %14, %cst_16 {dimension_numbers = #tpu.dot_dimension_numbers<[1], [0], [0], [1], [0, 0, 1, 1], [], []>} : vector<8x128xbf16>, vector<128x128xbf16>, vector<8x128xf32> -> vector<8x128xf32>
    %cst_17 = arith.constant dense<0.000000e+00> : vector<8x128xf32>
    %18 = tpu.matmul %0, %17, %cst_17 {dimension_numbers = #tpu.dot_dimension_numbers<[1], [0], [0], [1], [0, 0, 1, 1], [], []>} : vector<8x8xf32>, vector<8x128xf32>, vector<8x128xf32> -> vector<8x128xf32>
    %19 = vector.broadcast %16 : vector<1x128xf32> to vector<8x128xf32>
    %20 = arith.addf %18, %19 : vector<8x128xf32>
    %cst_18 = arith.constant 0.000000e+00 : f32
    %21 = vector.broadcast %cst_18 : f32 to vector<8x128xf32>
    %22 = arith.maximumf %20, %21 : vector<8x128xf32>
    %23 = arith.truncf %22 : vector<8x128xf32> to vector<8x128xbf16>
    %c2 = arith.constant 2 : index
    %c0_19 = arith.constant 0 : index
    %c0_20 = arith.constant 0 : index
    %24 = vector.load %arg2[%c2, %c0_19, %c0_20] : memref<3x128x128xbf16, #tpu.memory_space<vmem>>, vector<1x128x128xbf16>
    %25 = vector.shape_cast %24 : vector<1x128x128xbf16> to vector<128x128xbf16>
    %c2_21 = arith.constant 2 : index
    %c0_22 = arith.constant 0 : index
    %c0_23 = arith.constant 0 : index
    %26 = vector.load %arg3[%c2_21, %c0_22, %c0_23] : memref<3x1x128xf32, #tpu.memory_space<vmem>>, vector<1x1x128xf32>
    %27 = vector.shape_cast %26 : vector<1x1x128xf32> to vector<1x128xf32>
    %cst_24 = arith.constant dense<0.000000e+00> : vector<8x128xf32>
    %28 = tpu.matmul %23, %25, %cst_24 {dimension_numbers = #tpu.dot_dimension_numbers<[1], [0], [0], [1], [0, 0, 1, 1], [], []>} : vector<8x128xbf16>, vector<128x128xbf16>, vector<8x128xf32> -> vector<8x128xf32>
    %cst_25 = arith.constant dense<0.000000e+00> : vector<8x128xf32>
    %29 = tpu.matmul %0, %28, %cst_25 {dimension_numbers = #tpu.dot_dimension_numbers<[1], [0], [0], [1], [0, 0, 1, 1], [], []>} : vector<8x8xf32>, vector<8x128xf32>, vector<8x128xf32> -> vector<8x128xf32>
    %30 = vector.broadcast %27 : vector<1x128xf32> to vector<8x128xf32>
    %31 = arith.addf %29, %30 : vector<8x128xf32>
    %c0_26 = arith.constant 0 : index
    %c0_27 = arith.constant 0 : index
    %32 = vector.load %arg4[%c0_26, %c0_27] : memref<8x128xf32, #tpu.memory_space<vmem>>, vector<8x128xf32>
    tpu.vector_store %arg4[%c0_26, %c0_27], %31 {strides = array<i32>} : memref<8x128xf32, #tpu.memory_space<vmem>>, vector<8x128xf32>,
    return
  }
}

</mosaic_0001>

<bundles_post_ra>
// kernel: forward.1
= control target key start
LH: loop header
LB: loop body
LE: loop exit
PB: predicated region body
PF: predicated region fallthrough
CT: control target
= control target key end

     0   :  { %9 = vsyncpa [#allocation3], 0  ;;  %s786_s15 = smov [#allocation2]   ;;  %s884_s0 = inlined_call_operand.vmem [shape: f32[8,8], index: 0, kind: input, shape index: {}]   ;;  %s885_s1 = inlined_call_operand.vmem [shape: bf16[8,128], index: 1, kind: input, shape index: {}]   ;;  %s886_s2 = inlined_call_operand.hbm [shape: bf16[3,128,128], index: 2, kind: input, shape index: {}]   ;;  %s887_s3 = inlined_call_operand.vmem [shape: f32[3,1,128], index: 3, kind: input, shape index: {}]   ;;  %s888_s4 = inlined_call_operand.vmem [shape: f32[8,128], index: 4, kind: output, shape index: {}]  }
   0x1   :  { %s19_s16 = sshll.u32 %s786_s15, 4  ;;  %s20_s16 = int_to_ptr.vmem [resolvable:$true] %s19_s16 }
   0x2   :  { %s772_s17 = scalar_lea.vmem %s20_s16, 3072  ;;  %p777_p1 = scmp.lt.s32.totalorder %s20_s16, %s20_s16 }
   0x3   :  { %p773_p0 = scmp.ne.s32.totalorder %s20_s16, %s772_s17  ;;  %p778_p2 = scmp.lt.s32.totalorder %s772_s17, %s772_s17 }
   0x5   :  { %p779_p3 = por %p778_p2, %p777_p1 }
   0x7   :  { %p780_p4 = pnand %p779_p3, %p773_p0 }
   0x9   :  { %783 = shalt.err (!%p780_p4)
}
   0xa   :  { %s787_s18 = smov 64   ;;  %s788_s19 = smov 4  }
   0xb   :  { %25 = dma.hbm_to_vmem [thread:$0]  %s886_s2, 3072, %s20_s16, [#allocation3], %s787_s18, %s787_s18, %s788_s19  }
   0xc   :  { %784 = dma.done.wait [#allocation3], 3072  }
   0xd   :  { %785 = vsyncadd [#allocation3], 4294964224  ;;  %v789_v0 = vmov 0.0   ;;  %vm790_vm0 = vmmov 0   ;;  %v740_v1 = vld [vmem:[#allocation2 + $0x38] sm:$0xff]   ;;  %v741_v2 = vld [vmem:[#allocation2 + $0x30] sm:$0xff]  }
   0xe   :  { %660 = vmatprep.subr.bf16.mxu0 %v789_v0  ;;  %676 = vmatprep.mubr.msk.bf16.mxu0 %vm790_vm0, %v789_v0  ;;  %v742_v3 = vld [vmem:[#allocation2 + $0x28] sm:$0xff]   ;;  %v743_v4 = vld [vmem:[#allocation2 + $0x20] sm:$0xff]   ;;  %v744_v5 = vld [vmem:[#allocation2 + $0x18] sm:$0xff]   ;;  %vm145_vm1 = vcmask 64512  }
   0xf   :  { %685 = vmatprep.subr.bf16.mxu1 %v789_v0  ;;  %701 = vmatprep.mubr.msk.bf16.mxu1 %vm790_vm0, %v789_v0  ;;  %v745_v6 = vld [vmem:[#allocation2 + $0x10] sm:$0xff]   ;;  %v746_v7 = vld [vmem:[#allocation2 + $0x8] sm:$0xff]   ;;  %v747_v8 = vld [vmem:[#allocation2] sm:$0xff]  }
  0x10   :  { %661 = vmatpush3.bf16.msra.mxu0 %v740_v1  ;;  %v33_v9 = vld [vmem:[%s885_s1] sm:$0xf]  ;;  %v748_v10 = vld [vmem:[#allocation2 + $0x78] sm:$0xff]   ;;  %v749_v11 = vld [vmem:[#allocation2 + $0x70] sm:$0xff]  }
  0x11   :  { %662 = vmatprep.subr.bf16.mxu0 %v789_v0  ;;  %686 = vmatpush3.bf16.msra.mxu1 %v748_v10  ;;  %v750_v12 = vld [vmem:[#allocation2 + $0x68] sm:$0xff]   ;;  %v751_v13 = vld [vmem:[#allocation2 + $0x60] sm:$0xff]   ;;  %v752_v14 = vld [vmem:[#allocation2 + $0x58] sm:$0xff]  }
  0x12   :  { %687 = vmatprep.subr.bf16.mxu1 %v789_v0  ;;  %v753_v15 = vld [vmem:[#allocation2 + $0x50] sm:$0xff]   ;;  %v847_v16 = vld [vmem:[%s884_s0] sm:$0xff]  ;;  %v754_v21 = vld [vmem:[#allocation2 + $0x48] sm:$0xff]  }
  0x13   :  { %v755_v22 = vld [vmem:[#allocation2 + $0x40] sm:$0xff]   ;;  %v756_v29 = vld [vmem:[#allocation2 + $0xb8] sm:$0xff]   ;;  %v757_v30 = vld [vmem:[#allocation2 + $0xb0] sm:$0xff]  }
  0x14   :  { %663 = vmatpush3.bf16.msra.mxu0 %v741_v2  ;;  %v603_v23 = vld [vmem:[%s887_s3] ss:$0 sm:$0xff]  ;;  %v758_v31 = vld [vmem:[#allocation2 + $0xa8] sm:$0xff]   ;;  %v760_v33 = vld [vmem:[#allocation2 + $0x98] sm:$0xff]  }
  0x15   :  { %664 = vmatprep.subr.bf16.mxu0 %v789_v0  ;;  %688 = vmatpush3.bf16.msra.mxu1 %v749_v11  ;;  %v759_v32 = vld [vmem:[#allocation2 + $0xa0] sm:$0xff]   ;;  %v761_v34 = vld [vmem:[#allocation2 + $0x90] sm:$0xff]   ;;  %v762_v39 = vld [vmem:[#allocation2 + $0x88] sm:$0xff]  }
  0x16   :  { %689 = vmatprep.subr.bf16.mxu1 %v789_v0  ;;  %v763_v40 = vld [vmem:[#allocation2 + $0x80] sm:$0xff]  }
  0x17   :  { %v614_v41 = vld [vmem:[%s887_s3 + $0x1] ss:$0 sm:$0xff]  ;;  %v625_v51 = vld [vmem:[%s887_s3 + $0x2] ss:$0 sm:$0xff] }
  0x18   :  { %665 = vmatpush3.bf16.msra.mxu0 %v742_v3 }
  0x19   :  { %666 = vmatprep.subr.bf16.mxu0 %v789_v0  ;;  %690 = vmatpush3.bf16.msra.mxu1 %v750_v12 }
  0x1a   :  { %691 = vmatprep.subr.bf16.mxu1 %v789_v0 }
  0x1c   :  { %667 = vmatpush3.bf16.msra.mxu0 %v743_v4 }
  0x1d   :  { %668 = vmatprep.subr.bf16.mxu0 %v789_v0  ;;  %692 = vmatpush3.bf16.msra.mxu1 %v751_v13 }
  0x1e   :  { %693 = vmatprep.subr.bf16.mxu1 %v789_v0 }
  0x20   :  { %669 = vmatpush3.bf16.msra.mxu0 %v744_v5 }
  0x21   :  { %670 = vmatprep.subr.bf16.mxu0 %v789_v0  ;;  %694 = vmatpush3.bf16.msra.mxu1 %v752_v14 }
  0x22   :  { %695 = vmatprep.subr.bf16.mxu1 %v789_v0 }
  0x24   :  { %671 = vmatpush3.bf16.msra.mxu0 %v745_v6 }
  0x25   :  { %672 = vmatprep.subr.bf16.mxu0 %v789_v0  ;;  %696 = vmatpush3.bf16.msra.mxu1 %v753_v15 }
  0x26   :  { %697 = vmatprep.subr.bf16.mxu1 %v789_v0 }
  0x28   :  { %673 = vmatpush3.bf16.msra.mxu0 %v746_v7 }
  0x29   :  { %674 = vmatprep.subr.bf16.mxu0 %v789_v0  ;;  %698 = vmatpush3.bf16.msra.mxu1 %v754_v21 }
  0x2a   :  { %699 = vmatprep.subr.bf16.mxu1 %v789_v0 }
  0x2c   :  { %675 = vmatpush3.bf16.msra.mxu0 %v747_v8 }
  0x2d   :  { %680 = vmatprep.subr.mxu0 %v789_v0  ;;  %700 = vmatpush3.bf16.msra.mxu1 %v755_v22 }
  0x2e   :  { %710 = vmatprep.subr.bf16.mxu1 %v789_v0 }
  0x2f   :  { %677 = vmatmul.mubr.bf16.vlgmr.msra.gmra.mxu0 %v33_v9 }
  0x30   :  { %682 = vmatprep.mubr.msk.f32.mxu0 %vm790_vm0, %v789_v0 }
  0xef   :  { %v133_v17 = vpop.f32.mrf.mxu0 }
  0xf0   :  { %681 = vmatpush3.msra.mxu0 %v133_v17 }
  0xf1   :  { %v678_v18 = vpop.f32.mrf.mxu0  ;;  %683 = vmatmul.mubr.msk.f32.vlgmr.msra.gmra.mxu0 %vm145_vm1, %v847_v16  ;;  %705 = vmatprep.subr.mxu0 %v789_v0 }
  0xf2   :  { %707 = vmatprep.mubr.msk.f32.mxu0 %vm790_vm0, %v789_v0 }
  0xf3   :  { %v136_v19 = vpop.f32.mrf.mxu0 }
  0xf5   :  { %v679_v20 = vpop.f32.mrf.mxu0 }
 0x1b1   :  { %v215_v24 = vpop.f32.mrf.mxu0 }
 0x1b2   :  { %v216_v25 = vadd.f32 %v603_v23, %v215_v24 }
 0x1b3   :  { %v684_v26 = vpop.f32.mrf.mxu0 }
 0x1b4   :  { %v219_v27 = vmax.f32 %v216_v25, 0.0 }
 0x1b6   :  { %v220_v28 = vpack.c.bf16 %v219_v27, %v219_v27 }
 0x1b8   :  { %702 = vmatmul.mubr.bf16.vlgmr.msra.gmra.mxu1 %v220_v28 }
 0x1b9   :  { %726 = vmatprep.mubr.msk.bf16.mxu1 %vm790_vm0, %v789_v0  ;;  %711 = vmatpush3.bf16.msra.mxu1 %v756_v29 }
 0x1ba   :  { %712 = vmatprep.subr.bf16.mxu1 %v789_v0 }
 0x1bd   :  { %713 = vmatpush3.bf16.msra.mxu1 %v757_v30 }
 0x1be   :  { %714 = vmatprep.subr.bf16.mxu1 %v789_v0 }
 0x1c1   :  { %715 = vmatpush3.bf16.msra.mxu1 %v758_v31 }
 0x1c2   :  { %716 = vmatprep.subr.bf16.mxu1 %v789_v0 }
 0x1c5   :  { %717 = vmatpush3.bf16.msra.mxu1 %v759_v32 }
 0x1c6   :  { %718 = vmatprep.subr.bf16.mxu1 %v789_v0 }
 0x1c9   :  { %719 = vmatpush3.bf16.msra.mxu1 %v760_v33 }
 0x1ca   :  { %720 = vmatprep.subr.bf16.mxu1 %v789_v0 }
 0x1cd   :  { %721 = vmatpush3.bf16.msra.mxu1 %v761_v34 }
 0x1ce   :  { %722 = vmatprep.subr.bf16.mxu1 %v789_v0 }
 0x1d1   :  { %723 = vmatpush3.bf16.msra.mxu1 %v762_v39 }
 0x1d2   :  { %724 = vmatprep.subr.bf16.mxu1 %v789_v0 }
 0x1d5   :  { %725 = vmatpush3.bf16.msra.mxu1 %v763_v40 }
 0x278   :  { %v322_v35 = vpop.f32.mrf.mxu1 }
 0x279   :  { %706 = vmatpush3.msra.mxu0 %v322_v35 }
 0x27a   :  { %v703_v36 = vpop.f32.mrf.mxu1  ;;  %708 = vmatmul.mubr.msk.f32.vlgmr.msra.gmra.mxu0 %vm145_vm1, %v847_v16  ;;  %730 = vmatprep.subr.mxu0 %v789_v0 }
 0x27b   :  { %732 = vmatprep.mubr.msk.f32.mxu0 %vm790_vm0, %v789_v0 }
 0x27c   :  { %v325_v37 = vpop.f32.mrf.mxu1 }
 0x27e   :  { %v704_v38 = vpop.f32.mrf.mxu1 }
 0x33a   :  { %v400_v42 = vpop.f32.mrf.mxu0 }
 0x33b   :  { %v401_v43 = vadd.f32 %v614_v41, %v400_v42 }
 0x33c   :  { %v709_v44 = vpop.f32.mrf.mxu0 }
 0x33d   :  { %v404_v45 = vmax.f32 %v401_v43, 0.0 }
 0x33f   :  { %v405_v46 = vpack.c.bf16 %v404_v45, %v404_v45 }
 0x341   :  { %727 = vmatmul.mubr.bf16.vlgmr.msra.gmra.mxu1 %v405_v46 }
 0x401   :  { %v507_v47 = vpop.f32.mrf.mxu1 }
 0x402   :  { %731 = vmatpush3.msra.mxu0 %v507_v47 }
 0x403   :  { %v728_v48 = vpop.f32.mrf.mxu1  ;;  %733 = vmatmul.mubr.msk.f32.vlgmr.msra.gmra.mxu0 %vm145_vm1, %v847_v16 }
 0x405   :  { %v510_v49 = vpop.f32.mrf.mxu1 }
 0x407   :  { %v729_v50 = vpop.f32.mrf.mxu1 }
 0x4c3   :  { %v585_v52 = vpop.f32.mrf.mxu0 }
 0x4c4   :  { %v586_v53 = vadd.f32 %v625_v51, %v585_v52 }
 0x4c5   :  { %v734_v54 = vpop.f32.mrf.mxu0 }
 0x4c6   :  { %589 = vst [vmem:[%s888_s4] sm:$0xff] %v586_v53 }
 0x4c7   :  { %594 = vsyncpa [#allocation3], 1 }

</bundles_post_ra>
